<compile_context>
chip_gen: v7x
topology: tpu7x:2x2x1
jax: 0.10.0
libtpu: 0.0.40
codegen_flags: <defaults>
</compile_context>

<pallas_src>
import jax
import jax.numpy as jnp
from jax.experimental import pallas as pl
from jax.experimental.pallas import tpu as pltpu


def _gather_concat_kernel(labels_hbm, logits_hbm, out_labels_hbm, out_logits_hbm, sem):
    # All refs live in HBM (memory_space=pl.ANY). The "concat along dim 0" is a
    # straight contiguous copy of each stacked-shard slab into its output slab,
    # done as two overlapped HBM->HBM DMAs (zero VMEM traffic, zero compute).
    cp_labels = pltpu.make_async_copy(labels_hbm, out_labels_hbm, sem.at[0])
    cp_logits = pltpu.make_async_copy(logits_hbm, out_logits_hbm, sem.at[1])
    cp_labels.start()
    cp_logits.start()
    cp_labels.wait()
    cp_logits.wait()


def gather_and_select(labels_shards, logits_shards):
    """Simulated all_gather + cat(dim=0).

    labels_shards: (W, N)    int32   -- per-rank labels, stacked
    logits_shards: (W, N, C) float32 -- per-rank logits, stacked
    returns: (global_labels (W*N,), global_logits (W*N, C))
    """
    W, N = labels_shards.shape
    C = logits_shards.shape[-1]

    out_labels, out_logits = pl.pallas_call(
        _gather_concat_kernel,
        out_shape=(
            jax.ShapeDtypeStruct((W, N), labels_shards.dtype),
            jax.ShapeDtypeStruct((W, N, C), logits_shards.dtype),
        ),
        in_specs=[
            pl.BlockSpec(memory_space=pl.ANY),
            pl.BlockSpec(memory_space=pl.ANY),
        ],
        out_specs=(
            pl.BlockSpec(memory_space=pl.ANY),
            pl.BlockSpec(memory_space=pl.ANY),
        ),
        scratch_shapes=[pltpu.SemaphoreType.DMA((2,))],
        compiler_params=pltpu.CompilerParams(has_side_effects=True),
    )(labels_shards, logits_shards)

    # cat(dim=0) of the gathered rank shards == row-major reshape (metadata only).
    return out_labels.reshape(W * N), out_logits.reshape(W * N, C)


if __name__ == "__main__":
    # Simulated distributed setup: world_size W ranks, each holding a local
    # batch of N labels and (N, C) logits. (Module has no parameters.)
    W, N, C = 4, 8, 32

    key = jax.random.PRNGKey(0)
    k_lab, k_log = jax.random.split(key)
    labels_shards = jax.random.randint(k_lab, (W, N), 0, C, dtype=jnp.int32)
    logits_shards = jax.random.normal(k_log, (W, N, C), dtype=jnp.float32)

    global_labels, global_logits = gather_and_select(labels_shards, logits_shards)
    jax.block_until_ready((global_labels, global_logits))

    # Reference: all_gather + cat(dim=0) == reshape of the stacked shards.
    ref_labels = labels_shards.reshape(W * N)
    ref_logits = logits_shards.reshape(W * N, C)
    assert global_labels.shape == (W * N,) and global_labels.dtype == jnp.int32
    assert global_logits.shape == (W * N, C) and global_logits.dtype == jnp.float32
    assert bool(jnp.all(global_labels == ref_labels))
    assert bool(jnp.all(global_logits == ref_logits))

    print("KERNEL_OK")
</pallas_src>

<mosaic_0001>
module attributes {stable_mosaic.version = 11 : i64} {
  func.func @_gather_concat_kernel(%arg0: memref<4x8xi32, #tpu.memory_space<any>>, %arg1: memref<4x8x32xf32, #tpu.memory_space<any>>, %arg2: memref<4x8xi32, #tpu.memory_space<any>>, %arg3: memref<4x8x32xf32, #tpu.memory_space<any>>, %arg4: memref<2x!tpu.dma_semaphore, #tpu.memory_space<semaphore_mem>>) attributes {dimension_semantics = [], scalar_prefetch = 0 : i64, scratch_operands = 1 : i64, tpu.core_type = #tpu.core_type<tc>} {
    %c0_i32 = arith.constant 0 : i32
    %0 = tpu.memref_slice %arg4[%c0_i32] : memref<2x!tpu.dma_semaphore, #tpu.memory_space<semaphore_mem>> -> memref<1x!tpu.dma_semaphore, #tpu.memory_space<semaphore_mem>>
    %1 = tpu.memref_squeeze %0 : memref<1x!tpu.dma_semaphore, #tpu.memory_space<semaphore_mem>> -> memref<!tpu.dma_semaphore, #tpu.memory_space<semaphore_mem>>
    tpu.enqueue_dma source(%arg0 : memref<4x8xi32, #tpu.memory_space<any>>) target(%arg2 : memref<4x8xi32, #tpu.memory_space<any>>) target_semaphore(%1 : memref<!tpu.dma_semaphore, #tpu.memory_space<semaphore_mem>>)
    %c1_i32 = arith.constant 1 : i32
    %2 = tpu.memref_slice %arg4[%c1_i32] : memref<2x!tpu.dma_semaphore, #tpu.memory_space<semaphore_mem>> -> memref<1x!tpu.dma_semaphore, #tpu.memory_space<semaphore_mem>>
    %3 = tpu.memref_squeeze %2 : memref<1x!tpu.dma_semaphore, #tpu.memory_space<semaphore_mem>> -> memref<!tpu.dma_semaphore, #tpu.memory_space<semaphore_mem>>
    tpu.enqueue_dma source(%arg1 : memref<4x8x32xf32, #tpu.memory_space<any>>) target(%arg3 : memref<4x8x32xf32, #tpu.memory_space<any>>) target_semaphore(%3 : memref<!tpu.dma_semaphore, #tpu.memory_space<semaphore_mem>>)
    %c0_i32_0 = arith.constant 0 : i32
    %4 = tpu.memref_slice %arg4[%c0_i32_0] : memref<2x!tpu.dma_semaphore, #tpu.memory_space<semaphore_mem>> -> memref<1x!tpu.dma_semaphore, #tpu.memory_space<semaphore_mem>>
    %5 = tpu.memref_squeeze %4 : memref<1x!tpu.dma_semaphore, #tpu.memory_space<semaphore_mem>> -> memref<!tpu.dma_semaphore, #tpu.memory_space<semaphore_mem>>
    tpu.wait_dma2 semaphore(%5 : memref<!tpu.dma_semaphore, #tpu.memory_space<semaphore_mem>>) src(%arg0 : memref<4x8xi32, #tpu.memory_space<any>>) dst(%arg2 : memref<4x8xi32, #tpu.memory_space<any>>)
    %c1_i32_1 = arith.constant 1 : i32
    %6 = tpu.memref_slice %arg4[%c1_i32_1] : memref<2x!tpu.dma_semaphore, #tpu.memory_space<semaphore_mem>> -> memref<1x!tpu.dma_semaphore, #tpu.memory_space<semaphore_mem>>
    %7 = tpu.memref_squeeze %6 : memref<1x!tpu.dma_semaphore, #tpu.memory_space<semaphore_mem>> -> memref<!tpu.dma_semaphore, #tpu.memory_space<semaphore_mem>>
    tpu.wait_dma2 semaphore(%7 : memref<!tpu.dma_semaphore, #tpu.memory_space<semaphore_mem>>) src(%arg1 : memref<4x8x32xf32, #tpu.memory_space<any>>) dst(%arg3 : memref<4x8x32xf32, #tpu.memory_space<any>>)
    return
  }
}

</mosaic_0001>

<bundles_post_ra>
// kernel: tpu_custom_call.1
= control target key start
LH: loop header
LB: loop body
LE: loop exit
PB: predicated region body
PF: predicated region fallthrough
CT: control target
= control target key end

     0   :  { %s67_s12 = smov [#allocation2]   ;;  %s68_s13 = smov [#allocation3]   ;;  %s104_s0 = inlined_call_operand.hbm [shape: s32[4,8], index: 0, kind: input, shape index: {}]   ;;  %s105_s2 = inlined_call_operand.hbm [shape: s32[4,8], index: 2, kind: output, shape index: {0}]   ;;  %s106_s1 = inlined_call_operand.hbm [shape: f32[4,8,32], index: 1, kind: input, shape index: {}]   ;;  %s107_s3 = inlined_call_operand.hbm [shape: f32[4,8,32], index: 3, kind: output, shape index: {1}]  }
   0x1   :  { %s69_s14 = smov 0   ;;  %s70_s19 = smov [#allocation2 + $0x1]  }
   0x2   :  { %21 = dma.general %s104_s0, 64, %s105_s2, %s67_s12, %s68_s13, [#allocation4], %s69_s14, 0  }
   0x3   :  { %s71_s20 = smov [#allocation5]  }
   0x4   :  { %35 = dma.general %s106_s1, 512, %s107_s3, %s70_s19, %s71_s20, [#allocation6], %s69_s14, 0  }
   0x5   :  { %63 = dma.done.wait [#allocation2], 64 }
   0x6   :  { %64 = vsyncadd [#allocation2], 4294967232 }
   0x7   :  { %65 = dma.done.wait [#allocation2 + $0x1], 512 }
   0x8   :  { %66 = vsyncadd [#allocation2 + $0x1], 4294966784 }
   0x9   :  { %43 = vsyncmov [#allocation2] }
   0xc   :  { %s44_s25 = vpop.sfrf %43 }
   0xd   :  { %p56_p0 = scmp.ne.s32.totalorder %s44_s25, 0 }
   0xf   :  { %48 = shalt.err (%p56_p0)  }
  0x10   :  { %50 = vsyncmov [#allocation2 + $0x1] }
  0x13   :  { %s51_s26 = vpop.sfrf %50 }
  0x14   :  { %p57_p1 = scmp.ne.s32.totalorder %s51_s26, 0 }
  0x16   :  { %55 = shalt.err (%p57_p1)  }

</bundles_post_ra>
